<compile_context>
chip_gen: v5e
topology: v5e:2x2
jax: 0.10.0
libtpu: 0.0.40
codegen_flags: <defaults>
</compile_context>

<pallas_src>
import functools

import jax
import jax.numpy as jnp
from jax import lax
from jax.experimental import pallas as pl
from jax.experimental.pallas import tpu as pltpu


def _self_attention_kernel(x_ref, w_ref, o_ref, col_ref, *, H, W, Nb, Cin, Cpad):
    # x_ref:   (Nb, Cin, (H+4)*W)  row-padded, flattened input (compute dtype)
    # w_ref:   (2*Cout, 9*Cpad)    fused feature++attention weights, im2col layout
    # o_ref:   (Nb, Cout, H*W)     lane-dense output
    # col_ref: (9*Cpad, Nb*H*W)    im2col scratch (compute dtype)
    Cout = o_ref.shape[1]
    HW = H * W

    # Lanes that wrap across image rows for the dw = +/-1 taps correspond to
    # the SAME zero padding; mask them while filling the im2col scratch.
    col = lax.broadcasted_iota(jnp.int32, (1, HW), 1) % W
    mask_l = col != 0          # valid lanes for dw == -1 taps
    mask_r = col != (W - 1)    # valid lanes for dw == +1 taps

    zpad = None
    if Cpad > Cin:
        zpad = jnp.zeros((Cpad - Cin, HW), x_ref.dtype)

    # im2col fill: 9 static contiguous lane slices per folded batch element,
    # each stored as a tile-aligned (Cpad, HW) slab.
    for b in range(Nb):
        for kh in range(3):
            for kw in range(3):
                dh, dw = kh - 1, kw - 1
                t = kh * 3 + kw
                start = (dh + 2) * W + dw                # static, >= W - 1
                rhs = x_ref[b, :, start:start + HW]      # (Cin, HW)
                if dw == -1:
                    rhs = jnp.where(mask_l, rhs, jnp.zeros_like(rhs))
                elif dw == 1:
                    rhs = jnp.where(mask_r, rhs, jnp.zeros_like(rhs))
                if zpad is not None:
                    rhs = jnp.concatenate([rhs, zpad], axis=0)   # (Cpad, HW)
                col_ref[t * Cpad:(t + 1) * Cpad, b * HW:(b + 1) * HW] = rhs

    # One well-shaped MXU matmul for BOTH convolutions, f32 accumulation.
    acc = jnp.dot(w_ref[...], col_ref[...], preferred_element_type=jnp.float32)

    feat = acc[:Cout, :]                 # feature conv
    att = acc[Cout:, :]                  # attention logits
    out = feat * jax.nn.sigmoid(att)     # f32 epilogue (EUP sigmoid + VPU mul)
    for b in range(Nb):
        o_ref[b, :, :] = out[:, b * HW:(b + 1) * HW].astype(o_ref.dtype)


def _padded_vmem_bytes(shape, dtype):
    """Rough VMEM footprint of one buffer ((8,128)-tile padding on last 2 dims)."""
    *lead, s, l = shape
    sp = -(-s // 8) * 8
    lp = -(-l // 128) * 128
    n = 1
    for d in lead:
        n *= d
    return n * sp * lp * jnp.dtype(dtype).itemsize


def self_attention_pallas(x_nchw, w_conv, w_att, *,
                          compute_dtype=jnp.bfloat16, batch_block=None):
    """x_nchw: (N, Cin, H, W); w_conv/w_att: (Cout, Cin, 3, 3) PyTorch layout.

    Returns (N, Cout, H, W), matching the PyTorch module's forward().
    compute_dtype: operand dtype for the MXU matmul (default bf16, MXU-native
    on every TPU generation); accumulation and the gating epilogue stay f32.
    batch_block: batch elements folded per grid step (default keeps >= 2 steps).
    """
    N, Cin, H, W = x_nchw.shape
    Cout = w_conv.shape[0]
    HW = H * W
    Cpad = -(-Cin // 8) * 8                     # per-tap sublane-aligned channel pad
    Fp = (H + 4) * W                            # row-padded, flattened spatial size

    # Batch folding: Nb elements per grid step; keep >= 2 parallel grid steps
    # whenever possible so both v7x TensorCores stay busy.
    if batch_block is None:
        if N <= 2:
            batch_block = 1
        else:
            batch_block = max(d for d in range(1, N // 2 + 1) if N % d == 0)
    Nb = batch_block
    assert N % Nb == 0, "batch_block must divide N"

    cdt = compute_dtype if compute_dtype is not None else x_nchw.dtype
    x = x_nchw.astype(cdt)
    wc = w_conv.astype(cdt)
    wa = w_att.astype(cdt)

    # SAME halo along H in a single pad pass: 2 rows top / 2 bottom so every
    # static tap slice (start = (dh+2)*W + dw) stays in bounds after flattening.
    x_pad = jnp.pad(x, ((0, 0), (0, 0), (2, 2), (0, 0)))       # (N, Cin, H+4, W)
    x_flat = x_pad.reshape(N, Cin, Fp)                         # metadata-only reshape

    # Fused weights in im2col layout: rows [:Cout] = feature, [Cout:] = attention;
    # column t*Cpad + ci <-> (tap t = kh*3+kw, input channel ci), zero-padded to Cpad.
    def to_im2col(w):
        w9 = jnp.transpose(w, (0, 2, 3, 1)).reshape(Cout, 9, Cin)   # (Cout, 9, Cin)
        w9 = jnp.pad(w9, ((0, 0), (0, 0), (0, Cpad - Cin)))
        return w9.reshape(Cout, 9 * Cpad)
    w_all = jnp.concatenate([to_im2col(wc), to_im2col(wa)], axis=0)  # (2*Cout, 9*Cpad)

    kernel = functools.partial(_self_attention_kernel,
                               H=H, W=W, Nb=Nb, Cin=Cin, Cpad=Cpad)

    # VMEM budget: double-buffered in/out blocks + weights + im2col scratch.
    est = (2 * _padded_vmem_bytes((Nb, Cin, Fp), cdt)
           + 2 * _padded_vmem_bytes((2 * Cout, 9 * Cpad), cdt)
           + 2 * _padded_vmem_bytes((Nb, Cout, HW), x_nchw.dtype)
           + _padded_vmem_bytes((9 * Cpad, Nb * HW), cdt))
    vmem_limit = int(min(64 << 20, max(32 << 20, 2 * est)))

    out_flat = pl.pallas_call(
        kernel,
        out_shape=jax.ShapeDtypeStruct((N, Cout, HW), x_nchw.dtype),
        grid_spec=pltpu.PrefetchScalarGridSpec(
            num_scalar_prefetch=0,
            grid=(N // Nb,),
            in_specs=[
                pl.BlockSpec((Nb, Cin, Fp), lambda n: (n, 0, 0)),
                pl.BlockSpec((2 * Cout, 9 * Cpad), lambda n: (0, 0)),
            ],
            out_specs=pl.BlockSpec((Nb, Cout, HW), lambda n: (n, 0, 0)),
            scratch_shapes=[pltpu.VMEM((9 * Cpad, Nb * HW), cdt)],
        ),
        compiler_params=pltpu.CompilerParams(
            dimension_semantics=("parallel",),
            vmem_limit_bytes=vmem_limit,
        ),
    )(x_flat, w_all)

    return out_flat.reshape(N, Cout, H, W)


def _reference(x_nchw, w_conv, w_att):
    """Pure-JAX reference of the PyTorch forward (NCHW conv, SAME padding)."""
    dn = lax.conv_dimension_numbers(x_nchw.shape, w_conv.shape,
                                    ("NCHW", "OIHW", "NCHW"))
    feat = lax.conv_general_dilated(x_nchw, w_conv, (1, 1), "SAME",
                                    dimension_numbers=dn,
                                    precision=lax.Precision.HIGHEST)
    att = lax.conv_general_dilated(x_nchw, w_att, (1, 1), "SAME",
                                   dimension_numbers=dn,
                                   precision=lax.Precision.HIGHEST)
    return feat * jax.nn.sigmoid(att)


if __name__ == "__main__":
    N, Cin, Cout, H, W = 2, 4, 8, 16, 16

    key = jax.random.PRNGKey(0)
    kx, kw = jax.random.split(key)

    x = jax.random.normal(kx, (N, Cin, H, W), dtype=jnp.float32)
    # Deterministic parameter init mimicking the module's __init__:
    #   self.conv: random weights; self.attention: zeros.
    w_conv = 0.1 * jax.random.normal(kw, (Cout, Cin, 3, 3), dtype=jnp.float32)
    w_att = jnp.zeros((Cout, Cin, 3, 3), dtype=jnp.float32)

    ref = _reference(x, w_conv, w_att)

    # f32-operand run: tight structural check of the kernel.
    out_f32 = jax.block_until_ready(
        self_attention_pallas(x, w_conv, w_att, compute_dtype=jnp.float32))
    assert out_f32.shape == (N, Cout, H, W)
    assert jnp.allclose(out_f32, ref, atol=1e-4, rtol=1e-4), "f32 mismatch vs reference"

    # Default production path: bf16 MXU operands, f32 accumulation/epilogue.
    out_bf16 = jax.block_until_ready(self_attention_pallas(x, w_conv, w_att))
    assert out_bf16.shape == (N, Cout, H, W)
    assert jnp.allclose(out_bf16, ref, atol=5e-2, rtol=5e-2), "bf16 mismatch vs reference"

    print("KERNEL_OK")
</pallas_src>

<mosaic_0001>
module attributes {stable_mosaic.version = 11 : i64} {
  func.func @_self_attention_kernel(%arg0: i32, %arg1: memref<1x4x320xf32, #tpu.memory_space<vmem>>, %arg2: memref<16x72xf32, #tpu.memory_space<vmem>>, %arg3: memref<1x8x256xf32, #tpu.memory_space<vmem>>, %arg4: memref<72x256xf32, #tpu.memory_space<vmem>>) attributes {dimension_semantics = [#tpu.dimension_semantics<parallel>], iteration_bounds = array<i64: 2>, scalar_prefetch = 0 : i64, scratch_operands = 1 : i64, tpu.core_type = #tpu.core_type<tc>, window_params = [{transform_indices = @transform_0, window_bounds = array<i64: 1, 4, 320>}, {pipeline_mode = #tpu.pipeline_mode<synchronous>, transform_indices = @transform_1, window_bounds = array<i64: 16, 72>}, {transform_indices = @transform_2, window_bounds = array<i64: 1, 8, 256>}]} {
    %0 = tpu.iota {dimensions = array<i32: 1>} : vector<1x256xi32>
    %c16_i32 = arith.constant 16 : i32
    %c0_i32 = arith.constant 0 : i32
    %1 = arith.cmpi eq, %c16_i32, %c0_i32 : i32
    %c1_i32 = arith.constant 1 : i32
    %2 = arith.select %1, %c1_i32, %c16_i32 : i32
    %3 = vector.broadcast %2 : i32 to vector<1x256xi32>
    %4 = arith.remsi %0, %3 : vector<1x256xi32>
    %c0_i32_0 = arith.constant 0 : i32
    %5 = vector.broadcast %c0_i32_0 : i32 to vector<1x256xi32>
    %6 = arith.cmpi ne, %4, %5 : vector<1x256xi32>
    %c0_i32_1 = arith.constant 0 : i32
    %7 = vector.broadcast %c0_i32_1 : i32 to vector<1x256xi32>
    %8 = arith.cmpi slt, %4, %7 : vector<1x256xi32>
    %c0_i32_2 = arith.constant 0 : i32
    %9 = arith.cmpi slt, %2, %c0_i32_2 : i32
    %10 = vector.broadcast %9 : i1 to vector<1x256xi1>
    %11 = vector.broadcast %10 : vector<1x256xi1> to vector<1x256xi1>
    %12 = arith.xori %8, %11 : vector<1x256xi1>
    %13 = arith.andi %12, %6 : vector<1x256xi1>
    %14 = vector.broadcast %2 : i32 to vector<1x256xi32>
    %15 = arith.addi %4, %14 : vector<1x256xi32>
    %16 = arith.select %13, %15, %4 : vector<1x256xi1>, vector<1x256xi32>
    %c0_i32_3 = arith.constant 0 : i32
    %17 = vector.broadcast %c0_i32_3 : i32 to vector<1x256xi32>
    %18 = arith.cmpi ne, %16, %17 : vector<1x256xi32>
    %c15_i32 = arith.constant 15 : i32
    %19 = vector.broadcast %c15_i32 : i32 to vector<1x256xi32>
    %20 = arith.cmpi ne, %16, %19 : vector<1x256xi32>
    %cst = arith.constant 0.000000e+00 : f32
    %21 = vector.broadcast %cst : f32 to vector<4x256xf32>
    %c0 = arith.constant 0 : index
    %c0_4 = arith.constant 0 : index
    %c15 = arith.constant 15 : index
    %22 = vector.load %arg1[%c0, %c0_4, %c15] : memref<1x4x320xf32, #tpu.memory_space<vmem>>, vector<1x4x256xf32>
    %23 = vector.shape_cast %22 : vector<1x4x256xf32> to vector<4x256xf32>
    %cst_5 = arith.constant 0.000000e+00 : f32
    %24 = vector.broadcast %cst_5 : f32 to vector<4x256xf32>
    %25 = vector.shape_cast %18 : vector<1x256xi1> to vector<1x256xi1>
    %26 = vector.broadcast %25 : vector<1x256xi1> to vector<4x256xi1>
    %27 = arith.select %26, %23, %24 : vector<4x256xi1>, vector<4x256xf32>
    %28 = tpu.concatenate %27, %21 in 0 : vector<4x256xf32>, vector<4x256xf32> -> vector<8x256xf32>
    %c0_6 = arith.constant 0 : index
    %c0_7 = arith.constant 0 : index
    %29 = vector.load %arg4[%c0_6, %c0_7] : memref<72x256xf32, #tpu.memory_space<vmem>>, vector<8x256xf32>
    tpu.vector_store %arg4[%c0_6, %c0_7], %28 {strides = array<i32>} : memref<72x256xf32, #tpu.memory_space<vmem>>, vector<8x256xf32>,
    %c0_8 = arith.constant 0 : index
    %c0_9 = arith.constant 0 : index
    %c16 = arith.constant 16 : index
    %30 = vector.load %arg1[%c0_8, %c0_9, %c16] : memref<1x4x320xf32, #tpu.memory_space<vmem>>, vector<1x4x256xf32>
    %31 = vector.shape_cast %30 : vector<1x4x256xf32> to vector<4x256xf32>
    %32 = tpu.concatenate %31, %21 in 0 : vector<4x256xf32>, vector<4x256xf32> -> vector<8x256xf32>
    %c8 = arith.constant 8 : index
    %c0_10 = arith.constant 0 : index
    %33 = vector.load %arg4[%c8, %c0_10] : memref<72x256xf32, #tpu.memory_space<vmem>>, vector<8x256xf32>
    tpu.vector_store %arg4[%c8, %c0_10], %32 {strides = array<i32>} : memref<72x256xf32, #tpu.memory_space<vmem>>, vector<8x256xf32>,
    %c0_11 = arith.constant 0 : index
    %c0_12 = arith.constant 0 : index
    %c17 = arith.constant 17 : index
    %34 = vector.load %arg1[%c0_11, %c0_12, %c17] : memref<1x4x320xf32, #tpu.memory_space<vmem>>, vector<1x4x256xf32>
    %35 = vector.shape_cast %34 : vector<1x4x256xf32> to vector<4x256xf32>
    %cst_13 = arith.constant 0.000000e+00 : f32
    %36 = vector.broadcast %cst_13 : f32 to vector<4x256xf32>
    %37 = vector.shape_cast %20 : vector<1x256xi1> to vector<1x256xi1>
    %38 = vector.broadcast %37 : vector<1x256xi1> to vector<4x256xi1>
    %39 = arith.select %38, %35, %36 : vector<4x256xi1>, vector<4x256xf32>
    %40 = tpu.concatenate %39, %21 in 0 : vector<4x256xf32>, vector<4x256xf32> -> vector<8x256xf32>
    %c16_14 = arith.constant 16 : index
    %c0_15 = arith.constant 0 : index
    %41 = vector.load %arg4[%c16_14, %c0_15] : memref<72x256xf32, #tpu.memory_space<vmem>>, vector<8x256xf32>
    tpu.vector_store %arg4[%c16_14, %c0_15], %40 {strides = array<i32>} : memref<72x256xf32, #tpu.memory_space<vmem>>, vector<8x256xf32>,
    %c0_16 = arith.constant 0 : index
    %c0_17 = arith.constant 0 : index
    %c31 = arith.constant 31 : index
    %42 = vector.load %arg1[%c0_16, %c0_17, %c31] : memref<1x4x320xf32, #tpu.memory_space<vmem>>, vector<1x4x256xf32>
    %43 = vector.shape_cast %42 : vector<1x4x256xf32> to vector<4x256xf32>
    %cst_18 = arith.constant 0.000000e+00 : f32
    %44 = vector.broadcast %cst_18 : f32 to vector<4x256xf32>
    %45 = vector.shape_cast %18 : vector<1x256xi1> to vector<1x256xi1>
    %46 = vector.broadcast %45 : vector<1x256xi1> to vector<4x256xi1>
    %47 = arith.select %46, %43, %44 : vector<4x256xi1>, vector<4x256xf32>
    %48 = tpu.concatenate %47, %21 in 0 : vector<4x256xf32>, vector<4x256xf32> -> vector<8x256xf32>
    %c24 = arith.constant 24 : index
    %c0_19 = arith.constant 0 : index
    %49 = vector.load %arg4[%c24, %c0_19] : memref<72x256xf32, #tpu.memory_space<vmem>>, vector<8x256xf32>
    tpu.vector_store %arg4[%c24, %c0_19], %48 {strides = array<i32>} : memref<72x256xf32, #tpu.memory_space<vmem>>, vector<8x256xf32>,
    %c0_20 = arith.constant 0 : index
    %c0_21 = arith.constant 0 : index
    %c32 = arith.constant 32 : index
    %50 = vector.load %arg1[%c0_20, %c0_21, %c32] : memref<1x4x320xf32, #tpu.memory_space<vmem>>, vector<1x4x256xf32>
    %51 = vector.shape_cast %50 : vector<1x4x256xf32> to vector<4x256xf32>
    %52 = tpu.concatenate %51, %21 in 0 : vector<4x256xf32>, vector<4x256xf32> -> vector<8x256xf32>
    %c32_22 = arith.constant 32 : index
    %c0_23 = arith.constant 0 : index
    %53 = vector.load %arg4[%c32_22, %c0_23] : memref<72x256xf32, #tpu.memory_space<vmem>>, vector<8x256xf32>
    tpu.vector_store %arg4[%c32_22, %c0_23], %52 {strides = array<i32>} : memref<72x256xf32, #tpu.memory_space<vmem>>, vector<8x256xf32>,
    %c0_24 = arith.constant 0 : index
    %c0_25 = arith.constant 0 : index
    %c33 = arith.constant 33 : index
    %54 = vector.load %arg1[%c0_24, %c0_25, %c33] : memref<1x4x320xf32, #tpu.memory_space<vmem>>, vector<1x4x256xf32>
    %55 = vector.shape_cast %54 : vector<1x4x256xf32> to vector<4x256xf32>
    %cst_26 = arith.constant 0.000000e+00 : f32
    %56 = vector.broadcast %cst_26 : f32 to vector<4x256xf32>
    %57 = vector.shape_cast %20 : vector<1x256xi1> to vector<1x256xi1>
    %58 = vector.broadcast %57 : vector<1x256xi1> to vector<4x256xi1>
    %59 = arith.select %58, %55, %56 : vector<4x256xi1>, vector<4x256xf32>
    %60 = tpu.concatenate %59, %21 in 0 : vector<4x256xf32>, vector<4x256xf32> -> vector<8x256xf32>
    %c40 = arith.constant 40 : index
    %c0_27 = arith.constant 0 : index
    %61 = vector.load %arg4[%c40, %c0_27] : memref<72x256xf32, #tpu.memory_space<vmem>>, vector<8x256xf32>
    tpu.vector_store %arg4[%c40, %c0_27], %60 {strides = array<i32>} : memref<72x256xf32, #tpu.memory_space<vmem>>, vector<8x256xf32>,
    %c0_28 = arith.constant 0 : index
    %c0_29 = arith.constant 0 : index
    %c47 = arith.constant 47 : index
    %62 = vector.load %arg1[%c0_28, %c0_29, %c47] : memref<1x4x320xf32, #tpu.memory_space<vmem>>, vector<1x4x256xf32>
    %63 = vector.shape_cast %62 : vector<1x4x256xf32> to vector<4x256xf32>
    %cst_30 = arith.constant 0.000000e+00 : f32
    %64 = vector.broadcast %cst_30 : f32 to vector<4x256xf32>
    %65 = vector.shape_cast %18 : vector<1x256xi1> to vector<1x256xi1>
    %66 = vector.broadcast %65 : vector<1x256xi1> to vector<4x256xi1>
    %67 = arith.select %66, %63, %64 : vector<4x256xi1>, vector<4x256xf32>
    %68 = tpu.concatenate %67, %21 in 0 : vector<4x256xf32>, vector<4x256xf32> -> vector<8x256xf32>
    %c48 = arith.constant 48 : index
    %c0_31 = arith.constant 0 : index
    %69 = vector.load %arg4[%c48, %c0_31] : memref<72x256xf32, #tpu.memory_space<vmem>>, vector<8x256xf32>
    tpu.vector_store %arg4[%c48, %c0_31], %68 {strides = array<i32>} : memref<72x256xf32, #tpu.memory_space<vmem>>, vector<8x256xf32>,
    %c0_32 = arith.constant 0 : index
    %c0_33 = arith.constant 0 : index
    %c48_34 = arith.constant 48 : index
    %70 = vector.load %arg1[%c0_32, %c0_33, %c48_34] : memref<1x4x320xf32, #tpu.memory_space<vmem>>, vector<1x4x256xf32>
    %71 = vector.shape_cast %70 : vector<1x4x256xf32> to vector<4x256xf32>
    %72 = tpu.concatenate %71, %21 in 0 : vector<4x256xf32>, vector<4x256xf32> -> vector<8x256xf32>
    %c56 = arith.constant 56 : index
    %c0_35 = arith.constant 0 : index
    %73 = vector.load %arg4[%c56, %c0_35] : memref<72x256xf32, #tpu.memory_space<vmem>>, vector<8x256xf32>
    tpu.vector_store %arg4[%c56, %c0_35], %72 {strides = array<i32>} : memref<72x256xf32, #tpu.memory_space<vmem>>, vector<8x256xf32>,
    %c0_36 = arith.constant 0 : index
    %c0_37 = arith.constant 0 : index
    %c49 = arith.constant 49 : index
    %74 = vector.load %arg1[%c0_36, %c0_37, %c49] : memref<1x4x320xf32, #tpu.memory_space<vmem>>, vector<1x4x256xf32>
    %75 = vector.shape_cast %74 : vector<1x4x256xf32> to vector<4x256xf32>
    %cst_38 = arith.constant 0.000000e+00 : f32
    %76 = vector.broadcast %cst_38 : f32 to vector<4x256xf32>
    %77 = vector.shape_cast %20 : vector<1x256xi1> to vector<1x256xi1>
    %78 = vector.broadcast %77 : vector<1x256xi1> to vector<4x256xi1>
    %79 = arith.select %78, %75, %76 : vector<4x256xi1>, vector<4x256xf32>
    %80 = tpu.concatenate %79, %21 in 0 : vector<4x256xf32>, vector<4x256xf32> -> vector<8x256xf32>
    %c64 = arith.constant 64 : index
    %c0_39 = arith.constant 0 : index
    %81 = vector.load %arg4[%c64, %c0_39] : memref<72x256xf32, #tpu.memory_space<vmem>>, vector<8x256xf32>
    tpu.vector_store %arg4[%c64, %c0_39], %80 {strides = array<i32>} : memref<72x256xf32, #tpu.memory_space<vmem>>, vector<8x256xf32>,
    %c0_40 = arith.constant 0 : index
    %c0_41 = arith.constant 0 : index
    %82 = vector.load %arg2[%c0_40, %c0_41] : memref<16x72xf32, #tpu.memory_space<vmem>>, vector<16x72xf32>
    %c0_42 = arith.constant 0 : index
    %c0_43 = arith.constant 0 : index
    %83 = vector.load %arg4[%c0_42, %c0_43] : memref<72x256xf32, #tpu.memory_space<vmem>>, vector<72x256xf32>
    %cst_44 = arith.constant dense<0.000000e+00> : vector<16x256xf32>
    %84 = tpu.matmul %82, %83, %cst_44 {dimension_numbers = #tpu.dot_dimension_numbers<[1], [0], [0], [1], [0, 0, 1, 1], [], []>} : vector<16x72xf32>, vector<72x256xf32>, vector<16x256xf32> -> vector<16x256xf32>
    %85 = vector.extract_strided_slice %84 {offsets = [0, 0], sizes = [8, 256], strides = [1, 1]} : vector<16x256xf32> to vector<8x256xf32>
    %86 = vector.extract_strided_slice %84 {offsets = [8, 0], sizes = [8, 256], strides = [1, 1]} : vector<16x256xf32> to vector<8x256xf32>
    %87 = arith.negf %86 : vector<8x256xf32>
    %88 = math.exp %87 : vector<8x256xf32>
    %cst_45 = arith.constant 1.000000e+00 : f32
    %89 = vector.broadcast %cst_45 : f32 to vector<8x256xf32>
    %90 = arith.addf %89, %88 : vector<8x256xf32>
    %91 = arith.divf %89, %90 : vector<8x256xf32>
    %92 = arith.mulf %85, %91 : vector<8x256xf32>
    %c0_46 = arith.constant 0 : index
    %c0_47 = arith.constant 0 : index
    %c0_48 = arith.constant 0 : index
    %93 = vector.load %arg3[%c0_46, %c0_47, %c0_48] : memref<1x8x256xf32, #tpu.memory_space<vmem>>, vector<1x8x256xf32>
    %94 = vector.shape_cast %93 : vector<1x8x256xf32> to vector<8x256xf32>
    %95 = vector.shape_cast %92 : vector<8x256xf32> to vector<1x8x256xf32>
    tpu.vector_store %arg3[%c0_46, %c0_47, %c0_48], %95 {strides = array<i32>} : memref<1x8x256xf32, #tpu.memory_space<vmem>>, vector<1x8x256xf32>,
    return
  }
  func.func @transform_0(%arg0: i32) -> (i32, i32, i32) {
    %c0_i32 = arith.constant 0 : i32
    %c0_i32_0 = arith.constant 0 : i32
    %c0_i32_1 = arith.constant 0 : i32
    return %arg0, %c0_i32, %c0_i32_0 : i32, i32, i32
  }
  func.func @transform_1(%arg0: i32) -> (i32, i32) {
    %c0_i32 = arith.constant 0 : i32
    %c0_i32_0 = arith.constant 0 : i32
    %c0_i32_1 = arith.constant 0 : i32
    return %c0_i32, %c0_i32_0 : i32, i32
  }
  func.func @transform_2(%arg0: i32) -> (i32, i32, i32) {
    %c0_i32 = arith.constant 0 : i32
    %c0_i32_0 = arith.constant 0 : i32
    %c0_i32_1 = arith.constant 0 : i32
    return %arg0, %c0_i32, %c0_i32_0 : i32, i32, i32
  }
}

</mosaic_0001>

<bundles_post_ra>
// kernel: tpu_custom_call.1
= control target key start
LH: loop header
LB: loop body
LE: loop exit
PB: predicated region body
PF: predicated region fallthrough
CT: control target
= control target key end

     0   :  { %7 = vsyncpa [#allocation4], 0  ;;  %s1284_s0 = inlined_call_operand.hbm [shape: f32[2,4,320], index: 0, kind: input, shape index: {}]   ;;  %s1285_s1 = inlined_call_operand.hbm [shape: f32[16,72], index: 1, kind: input, shape index: {}]   ;;  %s1286_s2 = inlined_call_operand.hbm [shape: f32[2,8,256], index: 2, kind: output, shape index: {}]  }
   0x1   :  { %9 = vsyncpa [#allocation4 + $0x1], 0 }
   0x2   :  { %10 = vsyncpa [#allocation7], 0 }
   0x3   :  { %11 = vsyncpa [#allocation5], 0 }
   0x4   :  { %13 = vsyncpa [#allocation5 + $0x1], 0  ;;  %s992_s9 = smov 0   ;;  %s994_s10 = smov 0  }
   0x5   :  { %s996_s11 = smov 0   ;;  %s998_s12 = smov 0  }
   0x6 LB: > { %s108_s15 = sshll.u32 %s1285_s1, 4  ;;  %s1016_s16 = sadd.s32 4294967295, %s963_s12   ;;  %s963_s12 = sphi %s998_s12, %s1304_s12   ;;  %s959_s11 = sphi %s996_s11, %s1303_s11   ;;  %s955_s10 = sphi %s994_s10, %s1302_s10   ;;  %s951_s9 = sphi %s992_s9, %s1301_s9   ;;  %s109_s15 = int_to_ptr.hbm [resolvable:$true] %s108_s15 }
   0x7   : > { %p690_p0 = scmp.ge.s32.totalorder %s963_s12, 1  ;;  %p40_p1 = scmp.eq.s32.totalorder %s1016_s16, 0 }
   0x8   : > { %p97_p2 = scmp.lt.s32.totalorder %s963_s12, 3  ;;  %s965_s18 = smov [#allocation6]  }
   0x9   : > { %s110_s19 = sshll.u32 %s965_s18, 4  ;;  %s966_s20 = smov 128   ;;  %s111_s19 = int_to_ptr.vmem [resolvable:$true] %s110_s19 }
   0xa   : > { %p1021_p3 = pnand %p690_p0, %p97_p2  ;;  %s967_s21 = smov 8  }
   0xb   : > { %s689_s22 = sadd.s32 4294967294, %s963_s12   ;;  %s1032_s23 = sadd.s32 1, %s963_s12  }
   0xc   : > { %p750_p4 = pneg %p1021_p3  ;;  %s26_s24 = sadd.s32 1, %s959_s11 }
   0xd   : > { %s23_s25 = ssub.s32 %s963_s12, %s1032_s23  ;;  %p33_p7 = scmp.ne.s32.totalorder %s959_s11, %s955_s10 }
   0xe   : > { %p751_p6 = pnand %p750_p4, %p40_p1  ;;  %p24_p8 = scmp.eq.s32.totalorder %s23_s25, 0 }
   0xf   : > { %p34_p9 = scmp.eq.s32.totalorder %s963_s12, 0  ;;  %p39_p10 = scmp.ne.s32.totalorder %s955_s10, %s951_s9 }
  0x10   : > { %753 = dma.hbm_to_vmem [thread:$0]  (!%p751_p6), %s109_s15, 256, %s111_s19, [#allocation7], %s966_s20, %s966_s20, %s967_s21  }
  0x11   : > { %p84_p11 = scmp.eq.s32.totalorder %s1016_s16, 1  ;;  %p35_p12 = por %p34_p9, %p33_p7 }
  0x12   : > { %s1044_s26 = scalar_select %p24_p8, %s959_s11, %s26_s24  }
  0x13   : > { %p1048_p13 = por %p40_p1, %p39_p10  ;;  %p1052_p0 = por %p84_p11, %p33_p7 }
  0x14   : > { %p90_p2 = scmp.eq.s32.totalorder %s689_s22, 1  ;;  %p763_p4 = scmp.lt.s32.totalorder %s963_s12, 2 }
  0x15   : > { %s124_s29 = sand.u32 1, %s959_s11   ;;  %s740_s5 = smul.u32 12, %s963_s12 }
  0x16   : > { %p1058_p6 = por %p90_p2, %p39_p10  ;;  %s739_s3 = smul.u32 12, %s124_s29 }
  0x17   : > { %p1062_p8 = pnand %p763_p4, %p35_p12  ;;  %s133_s8 = scalar_lea.hbm %s1284_s0, %s740_s5 }
  0x18   : > { %s128_s13 = scalar_lea.vmem [#allocation3], %s739_s3  ;;  %s135_s15 = sshll.u32 %s133_s8, 4  ;;  %s136_s15 = int_to_ptr.hbm [resolvable:$true] %s135_s15 }
  0x19   : > { %s137_s14 = sshll.u32 %s128_s13, 4  ;;  %s125_s18 = scalar_lea.sflag [#allocation4], %s124_s29  ;;  %s138_s14 = int_to_ptr.vmem [resolvable:$true] %s137_s14 }
  0x1a   : > { %s863_s19 = sshra.s32 %s136_s15, 4  ;;  %p867_p9 = pneg %p1062_p8  ;;  %s864_s19 = int_to_ptr.hbm [resolvable:$true] %s863_s19 }
  0x1b   : > { %s865_s20 = scalar_lea.hbm %s864_s19, 12  ;;  %s870_s24 = scalar_lea.hbm %s1284_s0, 24 }
  0x1c   : > { %p866_p7 = scmp.ne.s32.totalorder %s864_s19, %s865_s20  ;;  %p871_p12 = scmp.lt.s32.totalorder %s864_s19, %s1284_s0 }
  0x1d   : > { %p872_p2 = scmp.lt.s32.totalorder %s870_s24, %s865_s20 }
  0x1e   : > { %p868_p10 = pnand %p867_p9, %p866_p7 }
  0x1f   : > { %p873_p4 = por %p872_p2, %p871_p12 }
  0x20   : > { %p869_p11 = pneg %p868_p10 }
  0x22   : > { %p874_p5 = pnand %p873_p4, %p869_p11 }
  0x24   : > { %877 = shalt.err (!%p874_p5)
}
  0x25   : > { %757 = dma.hbm_to_vmem [thread:$0]  (!%p1062_p8), %s136_s15, 192, %s138_s14, %s125_s18  }
  0x26   : > { %146 = sbr.rel (%p1021_p3) target bundleno = 430 (0x1ae), region = 28  ;;  %s1083_s29 = sand.u32 (!%p1021_p3), 1, %s955_s10  }
  0x27   : > { %s741_s3 = smul.u32 (!%p1021_p3), 12, %s1083_s29  ;;  %s149_s6 = scalar_lea.sflag (!%p1021_p3), [#allocation4], %s1083_s29 }
  0x29   : > { %s1087_s7 = scalar_lea.vmem (!%p1021_p3), [#allocation3], %s741_s3 }
  0x2b   : > { %938 = dma.done.wait (%p1048_p13), %s149_s6, 192  }
  0x2c   : > { %940 = vsyncadd (%p1048_p13), %s149_s6, 4294967104 }
  0x2d   : > { %942 = dma.done.wait (%p40_p1), [#allocation7], 256  }
  0x2e   : > { %944 = vsyncadd (%p40_p1), [#allocation7], 4294967040  ;;  %v1098_v0 = vld [vmem:[%s1087_s7] sm:$0xff]  ;;  %v211_v1 = vld [vmem:[%s1087_s7 + $0x8] sm:$0xf]  ;;  %s968_s17 = smov 111   ;;  %v179_v63 = vlaneseq }
  0x2f   : > { %218 = vst [vmem:[#allocation1] ss:$2 sm:$0xff] %v1098_v0  ;;  %v243_v2 = vld [vmem:[%s1087_s7 + $0x8] sm:$0xf]  ;;  %s969_s27 = smov 97   ;;  %vm237_vm0 = vcmask 1043456  }
  0x30   : > { %220 = vst [vmem:[#allocation1 + $0x10] ss:$2 sm:$0xff] %v211_v1  ;;  %v275_v6 = vld [vmem:[%s1087_s7 + $0x8] sm:$0xf]  ;;  %s970_s4 = smov 96   ;;  %s971_s8 = smov 95  }
  0x31   : > { %v306_v10 = vld [vmem:[%s1087_s7 + $0x8] sm:$0xf]  ;;  %s972_s13 = smov 81   ;;  %s973_s14 = smov 80   ;;  %vm466_vm1 = vcmask 646144   ;;  %vm407_vm2 = vcmask 662528  }
  0x32   : > { %v333_v14 = vld [vmem:[%s1087_s7 + $0x8] sm:$0xf]  ;;  %s974_s15 = smov 79   ;;  %s975_s18 = smov 112   ;;  %vm443_vm5 = vcmask 654336   ;;  %vm380_vm6 = vcmask 777216  }
  0x33   : > { %v365_v18 = vld [vmem:[%s1087_s7 + $0x8] sm:$0xf]  ;;  %s976_s19 = smov 113   ;;  %vm321_vm9 = vcmask 793600   ;;  %vm294_vm10 = vcmask 908288   ;;  %vm357_vm11 = vcmask 785408  }
  0x34   : > { %v392_v26 = vld [vmem:[%s1087_s7 + $0x8] sm:$0xf]  ;;  %vm230_vm12 = vcmask 924672   ;;  %vm267_vm13 = vcmask 916480   ;;  %vm497_vm14 = vcmask 588800   ;;  %s696_s20 = sshll.u32 %s1083_s29, 4 }
  0x35   : > { %v419_v33 = vld [vmem:[%s1087_s7 + $0x8] sm:$0xf]  ;;  %s708_s21 = sshll.u32 %s1016_s16, 4  ;;  %s178_s16 = scalar_lea.vmem [#allocation8], %s696_s20 }
  0x36   : > { %v1103_v3 = vld.sshfl [vmem:[#allocation1] sm:$0xff pattern:$0x75316420]  ;;  %v1105_v4 = vld.sshfl [vmem:[#allocation1 + $0x8] sm:$0xff pattern:$0x75316420]  ;;  %s604_s25 = scalar_lea.hbm %s1286_s2, %s708_s21 }
  0x37   : > { %246 = vst [vmem:[#allocation1] ss:$2 sm:$0xff] %v1098_v0  ;;  %v1108_v5 = vld.sshfl [vmem:[#allocation1 + $0x10] sm:$0xff pattern:$0x75316420]  ;;  %s606_s5 = sshll.u32 %s178_s16, 4  ;;  %s607_s5 = int_to_ptr.vmem [resolvable:$true] %s606_s5 }
  0x38   : > { %248 = vst [vmem:[#allocation1 + $0x10] ss:$2 sm:$0xff] %v243_v2  ;;  %v451_v37 = vld [vmem:[%s1087_s7 + $0x8] sm:$0xf]  ;;  %s608_s3 = sshll.u32 %s604_s25, 4  ;;  %s593_s6 = scalar_lea.sflag [#allocation5], %s1083_s29  ;;  %s609_s3 = int_to_ptr.hbm [resolvable:$true] %s608_s3 }
  0x39   : > { %s907_s7 = sshra.s32 %s609_s3, 4  ;;  %s908_s7 = int_to_ptr.hbm [resolvable:$true] %s907_s7 }
  0x3a   : > { %p914_p13 = scmp.lt.s32.totalorder %s908_s7, %s1286_s2 }
  0x3e   : > { %v249_v7 = vld.sshfl [vmem:[#allocation1] sm:$0xff pattern:$0x75316420]  ;;  %v250_v8 = vld.sshfl [vmem:[#allocation1 + $0x8] sm:$0xff pattern:$0x75316420] }
  0x3f   : > { %282 = vst [vmem:[#allocation1] ss:$2 sm:$0xff] %v1098_v0  ;;  %v1112_v9 = vld.sshfl [vmem:[#allocation1 + $0x10] sm:$0xff pattern:$0x75316420]  ;;  %v255_v30 = vsel %vm237_vm0, %v249_v7, 0.0 }
  0x40   : > { %284 = vst [vmem:[#allocation1 + $0x10] ss:$2 sm:$0xff] %v275_v6  ;;  %v256_v31 = vsel %vm237_vm0, %v250_v8, 0.0  ;;  %v257_v47 = vsel %vm237_vm0, %v1112_v9, 0.0 }
  0x41   : > { %v820_v32 = vpack.i.bf16 %v256_v31, %v255_v30 }
  0x46   : > { %v285_v11 = vld.sshfl [vmem:[#allocation1] sm:$0xff pattern:$0x75316420]  ;;  %v286_v12 = vld.sshfl [vmem:[#allocation1 + $0x8] sm:$0xff pattern:$0x75316420] }
  0x47   : > { %288 = vrot.lane.b32.xlu1 %v285_v11, %s968_s17  ;;  %309 = vst [vmem:[#allocation1] ss:$2 sm:$0xff] %v1098_v0  ;;  %v1117_v13 = vld.sshfl [vmem:[#allocation1 + $0x10] sm:$0xff pattern:$0x75316420]  ;;  %290 = vrot.lane.b32.xlu2 %v286_v12, %s968_s17 }
  0x48   : > { %311 = vst [vmem:[#allocation1 + $0x10] ss:$2 sm:$0xff] %v306_v10 }
  0x4e   : > { %v313_v15 = vld.sshfl [vmem:[#allocation1 + $0x8] sm:$0xff pattern:$0x75316420]  ;;  %v312_v16 = vld.sshfl [vmem:[#allocation1] sm:$0xff pattern:$0x75316420] }
  0x4f   : > { %v314_v17 = vld.sshfl [vmem:[#allocation1 + $0x10] sm:$0xff pattern:$0x75316420]  ;;  %315 = vrot.lane.b32.xlu1 %v312_v16, %s969_s27  ;;  %336 = vst [vmem:[#allocation1] ss:$2 sm:$0xff] %v1098_v0  ;;  %317 = vrot.lane.b32.xlu2 %v313_v15, %s969_s27 }
  0x50   : > { %319 = vrot.lane.b32.xlu0 %v314_v17, %s969_s27  ;;  %338 = vst [vmem:[#allocation1 + $0x10] ss:$2 sm:$0xff] %v333_v14 }
  0x56   : > { %v339_v19 = vld.sshfl [vmem:[#allocation1] sm:$0xff pattern:$0x75316420]  ;;  %v340_v20 = vld.sshfl [vmem:[#allocation1 + $0x8] sm:$0xff pattern:$0x75316420] }
  0x57   : > { %v341_v21 = vld.sshfl [vmem:[#allocation1 + $0x10] sm:$0xff pattern:$0x75316420]  ;;  %368 = vst [vmem:[#allocation1] ss:$2 sm:$0xff] %v1098_v0  ;;  %v345_v22 = vsel %vm237_vm0, %v339_v19, 0.0 }
  0x58   : > { %v347_v23 = vsel %vm237_vm0, %v341_v21, 0.0  ;;  %370 = vst [vmem:[#allocation1 + $0x10] ss:$2 sm:$0xff] %v365_v18  ;;  %v346_v24 = vsel %vm237_vm0, %v340_v20, 0.0 }
  0x59   : > { %355 = vrot.lane.b32.xlu0 %v347_v23, %s970_s4  ;;  %v810_v25 = vpack.i.bf16 %v346_v24, %v345_v22 }
  0x5b   : > { %811 = vrot.lane.b32.xlu2 %v810_v25, %s970_s4 }
  0x5e   : > { %v372_v27 = vld.sshfl [vmem:[#allocation1 + $0x8] sm:$0xff pattern:$0x75316420]  ;;  %v371_v28 = vld.sshfl [vmem:[#allocation1] sm:$0xff pattern:$0x75316420] }
  0x5f   : > { %v373_v29 = vld.sshfl [vmem:[#allocation1 + $0x10] sm:$0xff pattern:$0x75316420]  ;;  %395 = vst [vmem:[#allocation1] ss:$2 sm:$0xff] %v1098_v0 }
  0x60   : > { %397 = vst [vmem:[#allocation1 + $0x10] ss:$2 sm:$0xff] %v392_v26  ;;  %378 = vrot.lane.b32.xlu1 %v373_v29, %s971_s8 }
  0x61   : > { %376 = vrot.lane.b32.xlu0 %v372_v27, %s971_s8 }
  0x63   : > { %374 = vrot.lane.b32.xlu2 %v371_v28, %s971_s8  ;;  %s913_s8 = scalar_lea.hbm %s1286_s2, 32 }
  0x66   : > { %v399_v34 = vld.sshfl [vmem:[#allocation1 + $0x8] sm:$0xff pattern:$0x75316420]  ;;  %v398_v35 = vld.sshfl [vmem:[#allocation1] sm:$0xff pattern:$0x75316420] }
  0x67   : > { %v400_v36 = vld.sshfl [vmem:[#allocation1 + $0x10] sm:$0xff pattern:$0x75316420]  ;;  %422 = vst [vmem:[#allocation1] ss:$2 sm:$0xff] %v1098_v0 }
  0x68   : > { %424 = vst [vmem:[#allocation1 + $0x10] ss:$2 sm:$0xff] %v419_v33  ;;  %405 = vrot.lane.b32.xlu1 %v400_v36, %s972_s13 }
  0x69   : > { %403 = vrot.lane.b32.xlu0 %v399_v34, %s972_s13 }
  0x6b   : > { %401 = vrot.lane.b32.xlu2 %v398_v35, %s972_s13 }
  0x6e   : > { %v425_v38 = vld.sshfl [vmem:[#allocation1] sm:$0xff pattern:$0x75316420]  ;;  %v426_v39 = vld.sshfl [vmem:[#allocation1 + $0x8] sm:$0xff pattern:$0x75316420] }
  0x6f   : > { %v427_v40 = vld.sshfl [vmem:[#allocation1 + $0x10] sm:$0xff pattern:$0x75316420]  ;;  %v431_v41 = vsel %vm237_vm0, %v425_v38, 0.0  ;;  %v432_v42 = vsel %vm237_vm0, %v426_v39, 0.0 }
  0x70   : > { %456 = vst [vmem:[#allocation1 + $0x10] ss:$2 sm:$0xff] %v451_v37  ;;  %v815_v43 = vpack.i.bf16 %v432_v42, %v431_v41  ;;  %v433_v44 = vsel %vm237_vm0, %v427_v40, 0.0 }
  0x71   : > { %454 = vst [vmem:[#allocation1] ss:$2 sm:$0xff] %v1098_v0  ;;  %v180_v0 = vand.u32 127, %v179_v63 }
  0x72   : > { %816 = vrot.lane.b32.xlu1 %v815_v43, %s973_s14 }
  0x73   : > { %441 = vrot.lane.b32.xlu2 %v433_v44, %s973_s14 }
  0x77   : > { %v459_v45 = vld.sshfl [vmem:[#allocation1 + $0x10] sm:$0xff pattern:$0x75316420] }
  0x78   : > { %v457_v46 = vld.sshfl [vmem:[#allocation1] sm:$0xff pattern:$0x75316420]  ;;  %v458_v48 = vld.sshfl [vmem:[#allocation1 + $0x8] sm:$0xff pattern:$0x75316420] }
  0x79   : > { %460 = vrot.lane.b32.xlu0 %v457_v46, %s974_s15 }
  0x7a   : > { %464 = vrot.lane.b32.xlu1 %v459_v45, %s974_s15 }
  0x7b   : > { %265 = vrot.lane.b32.xlu2 %v257_v47, %s975_s18 }
  0x81   : > { %462 = vrot.lane.b32.xlu0 %v458_v48, %s974_s15 }
  0x82   : > { %821 = vrot.lane.b32.xlu1 %v820_v32, %s975_s18 }
  0x83   : > { %228 = vrot.lane.b32.xlu2 %v1108_v5, %s976_s19  ;;  %v186_v5 = vand.u32 15, %v180_v0 }
  0x85   : > { %vm1159_vm3 = vcmp.ne.s32.totalorder %v186_v5, 15  ;;  %vm1184_vm7 = vcmp.ne.s32.totalorder %v186_v5, 0 }
  0x89   : > { %292 = vrot.lane.b32.xlu0 %v1117_v13, %s968_s17  ;;  %s909_s17 = scalar_lea.hbm %s908_s7, 16 }
  0x8a   : > { %226 = vrot.lane.b32.xlu1 %v1105_v4, %s976_s19  ;;  %v181_v4 = vadd.s32 128, %v180_v0  ;;  %p910_p1 = scmp.ne.s32.totalorder %s908_s7, %s909_s17  ;;  %p915_p8 = scmp.lt.s32.totalorder %s913_s8, %s909_s17 }
  0x8c   : > { %v193_v6 = vand.u32 15, %v181_v4  ;;  %p911_p3 = pnand %p910_p1, %p1052_p0  ;;  %p916_p7 = por %p915_p8, %p914_p13 }
  0x8e   : > { %vm1163_vm4 = vcmp.ne.s32.totalorder %v193_v6, 15  ;;  %vm1192_vm8 = vcmp.ne.s32.totalorder %v193_v6, 0  ;;  %p912_p5 = pneg %p911_p3 }
  0x90   : > { %p917_p9 = pnand %p916_p7, %p912_p5 }
  0x91   : > { %224 = vrot.lane.b32.xlu0 %v1103_v3, %s976_s19 }
  0xa1   : > { %v1145_v49 = vpop.permute.xlu2 %290 }
  0xa9   : > { %v1151_v52 = vpop.permute.xlu2 %317 }
  0xb5   : > { %v1157_v55 = vpop.permute.xlu2 %811 }
  0xb6   : > { %v813_v24 = vunpack.i.l.bf16 %v1157_v55  ;;  %v814_v28 = vunpack.i.h.bf16 %v1157_v55  ;;  %v477_v55 = vld [vmem:[#allocation6] sm:$0xff] }
  0xb8   : > { %v358_v35 = vsel %vm357_vm11, %v813_v24, %v814_v28 }
  0xb9   : > { %v1147_v50 = vpop.permute.xlu1 %288 }
  0xba   : > { %v295_v36 = vsel %vm294_vm10, %v1147_v50, %v1145_v49 }
  0xbb   : > { %v299_v45 = vsel %vm1159_vm3, %v295_v36, 0.0 }
  0xbd   : > { %v375_v58 = vpop.permute.xlu2 %374 }
  0xc1   : > { %v1153_v53 = vpop.permute.xlu1 %315 }
  0xc2   : > { %v1149_v51 = vpop.permute.xlu0 %319  ;;  %v322_v32 = vsel %vm321_vm9, %v1153_v53, %v1151_v52 }
  0xc3   : > { %v323_v34 = vsel %vm321_vm9, %v1151_v52, %v1149_v51  ;;  %v326_v42 = vsel %vm1184_vm7, %v322_v32, 0.0 }
  0xc4   : > { %v327_v44 = vsel %vm1192_vm8, %v323_v34, 0.0 }
  0xc5   : > { %v402_v61 = vpop.permute.xlu2 %401 }
  0xcb   : > { %v1155_v54 = vpop.permute.xlu0 %355 }
  0xcc   : > { %v359_v37 = vsel %vm357_vm11, %v814_v28, %v1155_v54  ;;  %v478_v54 = vld [vmem:[#allocation6 + $0x8] sm:$0xff] }
  0xcd   : > { %v442_v2 = vpop.permute.xlu2 %441 }
  0xd2   : > { %v379_v56 = vpop.permute.xlu1 %378 }
  0xd3   : > { %v377_v57 = vpop.permute.xlu0 %376 }
  0xd4   : > { %v381_v21 = vsel %vm380_vm6, %v375_v58, %v377_v57  ;;  %v382_v25 = vsel %vm380_vm6, %v377_v57, %v379_v56 }
  0xd5   : > { %v1167_v14 = vpop.permute.xlu2 %265  ;;  %v385_v31 = vsel %vm1159_vm3, %v381_v21, 0.0  ;;  %v386_v33 = vsel %vm1163_vm4, %v382_v25, 0.0 }
  0xda   : > { %v406_v59 = vpop.permute.xlu1 %405 }
  0xdb   : > { %v404_v60 = vpop.permute.xlu0 %403 }
  0xdc   : > { %v408_v17 = vsel %vm407_vm2, %v402_v61, %v404_v60  ;;  %v409_v19 = vsel %vm407_vm2, %v404_v60, %v406_v59 }
  0xdd   : > { %v412_v26 = vsel %vm1184_vm7, %v408_v17, 0.0  ;;  %v413_v29 = vsel %vm1192_vm8, %v409_v19, 0.0  ;;  %v229_v38 = vpop.permute.xlu2 %228 }
  0xe4   : > { %v817_v62 = vpop.permute.xlu1 %816 }
  0xe5   : > { %v819_v7 = vunpack.i.h.bf16 %v817_v62  ;;  %v818_v8 = vunpack.i.l.bf16 %v817_v62 }
  0xe7   : > { %v444_v20 = vsel %vm443_vm5, %v818_v8, %v819_v7  ;;  %v445_v22 = vsel %vm443_vm5, %v819_v7, %v442_v2 }
  0xeb   : > { %v461_v1 = vpop.permute.xlu0 %460 }
  0xec   : > { %v465_v3 = vpop.permute.xlu1 %464 }
  0xf3   : > { %v463_v9 = vpop.permute.xlu0 %462 }
  0xf4   : > { %v467_v11 = vsel %vm466_vm1, %v461_v1, %v463_v9  ;;  %v468_v13 = vsel %vm466_vm1, %v463_v9, %v465_v3  ;;  %v1176_v18 = vpop.permute.xlu1 %821 }
  0xf5   : > { %v471_v15 = vsel %vm1159_vm3, %v467_v11, 0.0  ;;  %v472_v16 = vsel %vm1163_vm4, %v468_v13, 0.0  ;;  %v823_v40 = vunpack.i.l.bf16 %v1176_v18  ;;  %v824_v43 = vunpack.i.h.bf16 %v1176_v18 }
  0xf6   : > { %709 = vmatpush.msk.msra.mxu0 %vm237_vm0, %v471_v15  ;;  %721 = vmatpush.msk.msra.mxu2 %vm237_vm0, %v471_v15 }
  0xf7   : > { %715 = vmatpush.msk.msra.mxu1 %vm237_vm0, %v472_v16  ;;  %730 = vmatpush.msk.msra.mxu3 %vm237_vm0, %v472_v16  ;;  %v269_v51 = vsel %vm267_vm13, %v824_v43, %v1167_v14 }
  0xf8   : > { %512 = vmatpush.msra.mxu0 %v444_v20  ;;  %722 = vmatpush.msra.mxu2 %v444_v20 }
  0xf9   : > { %535 = vmatpush.msra.mxu1 %v445_v22  ;;  %731 = vmatpush.msra.mxu3 %v445_v22 }
  0xfa   : > { %710 = vmatpush.msk.msra.mxu0 %vm237_vm0, %v412_v26  ;;  %723 = vmatpush.msk.msra.mxu2 %vm237_vm0, %v412_v26 }
  0xfb   : > { %716 = vmatpush.msk.msra.mxu1 %vm237_vm0, %v413_v29  ;;  %732 = vmatpush.msk.msra.mxu3 %vm237_vm0, %v413_v29  ;;  %v293_v30 = vpop.permute.xlu0 %292 }
  0xfc   : > { %711 = vmatpush.msk.msra.mxu0 %vm237_vm0, %v385_v31  ;;  %724 = vmatpush.msk.msra.mxu2 %vm237_vm0, %v385_v31  ;;  %v227_v39 = vpop.permute.xlu1 %226  ;;  %v296_v41 = vsel %vm294_vm10, %v1145_v49, %v293_v30  ;;  %v268_v49 = vsel %vm267_vm13, %v823_v40, %v824_v43 }
  0xfd   : > { %717 = vmatpush.msk.msra.mxu1 %vm237_vm0, %v386_v33  ;;  %733 = vmatpush.msk.msra.mxu3 %vm237_vm0, %v386_v33  ;;  %v232_v46 = vsel %vm230_vm12, %v227_v39, %v229_v38  ;;  %v300_v47 = vsel %vm1163_vm4, %v296_v41, 0.0 }
  0xfe   : > { %515 = vmatpush.msra.mxu0 %v358_v35  ;;  %725 = vmatpush.msra.mxu2 %v358_v35  ;;  %v236_v52 = vsel %vm1192_vm8, %v232_v46, 0.0 }
  0xff   : > { %538 = vmatpush.msra.mxu1 %v359_v37  ;;  %734 = vmatpush.msra.mxu3 %v359_v37 }
 0x100   : > { %712 = vmatpush.msk.msra.mxu0 %vm237_vm0, %v326_v42  ;;  %726 = vmatpush.msk.msra.mxu2 %vm237_vm0, %v326_v42 }
 0x101   : > { %718 = vmatpush.msk.msra.mxu1 %vm237_vm0, %v327_v44  ;;  %735 = vmatpush.msk.msra.mxu3 %vm237_vm0, %v327_v44 }
 0x102   : > { %713 = vmatpush.msk.msra.mxu0 %vm237_vm0, %v299_v45  ;;  %727 = vmatpush.msk.msra.mxu2 %vm237_vm0, %v299_v45 }
 0x103   : > { %719 = vmatpush.msk.msra.mxu1 %vm237_vm0, %v300_v47  ;;  %736 = vmatpush.msk.msra.mxu3 %vm237_vm0, %v300_v47  ;;  %v225_v48 = vpop.permute.xlu0 %224 }
 0x104   : > { %v231_v50 = vsel %vm230_vm12, %v225_v48, %v227_v39  ;;  %518 = vmatpush.msra.mxu0 %v268_v49  ;;  %728 = vmatpush.msra.mxu2 %v268_v49 }
 0x105   : > { %541 = vmatpush.msra.mxu1 %v269_v51  ;;  %737 = vmatpush.msra.mxu3 %v269_v51  ;;  %v235_v53 = vsel %vm1184_vm7, %v231_v50, 0.0 }
 0x106   : > { %714 = vmatpush.msk.msra.mxu0 %vm237_vm0, %v235_v53  ;;  %729 = vmatpush.msk.msra.mxu2 %vm237_vm0, %v235_v53 }
 0x107   : > { %720 = vmatpush.msk.msra.mxu1 %vm237_vm0, %v236_v52  ;;  %738 = vmatpush.msk.msra.mxu3 %vm237_vm0, %v236_v52 }
 0x108   : > { %698 = vmatmul.msk.f32.vlgmr.msra.gmra.mxu2 %vm497_vm14, %v478_v54  ;;  %700 = vmatmul.msk.f32.vlgmr.msra.gmra.mxu3 %vm497_vm14, %v478_v54 }
 0x109   : > { %697 = vmatmul.msk.f32.vlgmr.msra.gmra.mxu0 %vm497_vm14, %v477_v55  ;;  %699 = vmatmul.msk.f32.vlgmr.msra.gmra.mxu1 %vm497_vm14, %v477_v55 }
 0x186   : > { %v521_v13 = vpop.f32.mrf.mxu0  ;;  %v544_v17 = vpop.f32.mrf.mxu1 }
 0x18b   : > { %v524_v56 = vpop.f32.mrf.mxu2  ;;  %v547_v57 = vpop.f32.mrf.mxu3 }
 0x18c   : > { %v701_v58 = vmul.f32 -1.442695, %v524_v56  ;;  %v702_v59 = vmul.f32 -1.442695, %v547_v57 }
 0x18e   : > { %825 = vpow2.f32 %v701_v58 }
 0x18f   : > { %827 = vpow2.f32 %v702_v59 }
 0x194   : > { %v826_v60 = vpop.eup %825 }
 0x195   : > { %v828_v61 = vpop.eup %827  ;;  %v556_v62 = vadd.f32 1.0, %v826_v60 }
 0x196   : > { %v557_v63 = vadd.f32 1.0, %v828_v61 }
 0x197   : > { %829 = vrcp.f32 %v556_v62  ;;  %v569_v5 = vand.u32 2147483648, %v556_v62  ;;  %v567_v8 = vand.u32 2147483647, %v556_v62  ;;  %vm563_vm1 = vweird.f32 %v556_v62 }
 0x198   : > { %831 = vrcp.f32 %v557_v63  ;;  %v584_v9 = vand.u32 2147483648, %v557_v63  ;;  %v582_v11 = vand.u32 2147483647, %v557_v63  ;;  %vm578_vm3 = vweird.f32 %v557_v63 }
 0x199   : > { %v570_v14 = vor.u32 1.1754944e-38, %v569_v5  ;;  %vm568_vm4 = vcmp.eq.f32.partialorder %v567_v8, 8.507059e+37 }
 0x19a   : > { %v585_v18 = vor.u32 1.1754944e-38, %v584_v9  ;;  %vm583_vm6 = vcmp.eq.f32.partialorder %v582_v11, 8.507059e+37 }
 0x19d   : > { %v830_v0 = vpop.eup %829 }
 0x19e   : > { %v832_v1 = vpop.eup %831  ;;  %v559_v2 = vmul.f32 %v830_v0, %v556_v62  ;;  %vm564_vm15 = vweird.f32 %v830_v0 }
 0x19f   : > { %v574_v3 = vmul.f32 %v832_v1, %v557_v63  ;;  %vm579_vm0 = vweird.f32 %v832_v1  ;;  %vm565_vm2 = vmor %vm563_vm1, %vm564_vm15 }
 0x1a0   : > { %v560_v4 = vsub.f32 1.0, %v559_v2  ;;  %vm580_vm5 = vmor %vm578_vm3, %vm579_vm0 }
 0x1a1   : > { %v575_v6 = vsub.f32 1.0, %v574_v3 }
 0x1a2   : > { %v561_v7 = vmul.f32 %v830_v0, %v560_v4 }
 0x1a3   : > { %v576_v10 = vmul.f32 %v832_v1, %v575_v6 }
 0x1a4   : > { %v562_v12 = vadd.f32 %v830_v0, %v561_v7 }
 0x1a5   : > { %v577_v15 = vadd.f32 %v832_v1, %v576_v10 }
 0x1a6   : > { %v566_v16 = vsel %vm565_vm2, %v830_v0, %v562_v12 }
 0x1a7   : > { %v571_v19 = vsel %vm568_vm4, %v570_v14, %v566_v16  ;;  %v581_v20 = vsel %vm580_vm5, %v832_v1, %v577_v15 }
 0x1a8   : > { %v588_v21 = vmul.f32 %v571_v19, %v521_v13  ;;  %v586_v22 = vsel %vm583_vm6, %v585_v18, %v581_v20 }
 0x1a9   : > { %v589_v23 = vmul.f32 %v586_v22, %v544_v17 }
 0x1aa   : > { %590 = vst [vmem:[%s178_s16] sm:$0xff] %v588_v21 }
 0x1ab   : > { %591 = vst [vmem:[%s178_s16 + $0x8] sm:$0xff] %v589_v23 }
 0x1ac   : > { %920 = shalt.err (!%p917_p9)
}
 0x1ad   : > { %748 = dma.vmem_to_hbm [thread:$0]  (%p1052_p0), %s607_s5, 256, %s609_s3, %s593_s6  }
 0x1ae PF: > { %s620_s29 = sand.u32 1, %s951_s9   ;;  %p1300_p10 = scmp.ge.s32.totalorder %s963_s12, 2 }
 0x1af   : > { %s621_s15 = scalar_lea.sflag [#allocation5], %s620_s29 }
 0x1b0   : > { %p759_p11 = pnand %p1300_p10, %p1058_p6 }
 0x1b2   : > { %p760_p12 = pneg %p759_p11 }
 0x1b4   : > { %946 = dma.done.wait (%p760_p12), %s621_s15, 256  }
 0x1b5   : > { %948 = vsyncadd (%p760_p12), %s621_s15, 4294967040  ;;  %p16_p2 = scmp.ge.s32.totalorder %s1032_s23, 4   ;;  %s1301_s9 = smov %s955_s10 }
 0x1b6   : > { %s1302_s10 = smov %s959_s11  ;;  %s1303_s11 = smov %s1044_s26 }
 0x1b7   : > { %s1304_s12 = smov %s1032_s23  ;;  %18 = sbr.rel (!%p16_p2) target bundleno = 6 (0x6), region = 86 }
 0x1bc   :  { %627 = vsyncpa [#allocation4], 1 }
 0x1bd   :  { %629 = vsyncpa [#allocation4 + $0x1], 1 }
 0x1be   :  { %630 = vsyncpa [#allocation7], 1 }
 0x1bf   :  { %631 = vsyncpa [#allocation5], 1 }
 0x1c0   :  { %633 = vsyncpa [#allocation5 + $0x1], 1 }

</bundles_post_ra>
